<compile_context>
chip_gen: v5e
topology: v5e:2x2
jax: 0.10.0
libtpu: 0.0.40
codegen_flags: <defaults>
</compile_context>

<pallas_src>
import functools

import jax
import jax.numpy as jnp
import numpy as np
from jax.experimental import pallas as pl
from jax.experimental.pallas import tpu as pltpu


def _routing_kernel(x_ref, w_ref, g_ref, b_ref, o_ref, *, eps: float):
    # x_ref: (bb, N*D)   w_ref: (N*D, N*D)   g_ref/b_ref: (1, N*D)   o_ref: (bb, N*D)
    x = x_ref[...]

    # Fused CapsFPN cascade: one lane-dense MXU matmul.
    fp = jnp.dot(x, w_ref[...], preferred_element_type=jnp.float32)   # (bb, N*D)

    # LayerNorm over [N, H, W] == the full flattened row (per batch element).
    mean = jnp.mean(fp, axis=-1, keepdims=True)                       # (bb, 1)
    centered = fp - mean
    var = jnp.mean(centered * centered, axis=-1, keepdims=True)       # (bb, 1)
    inv = jax.lax.rsqrt(var + eps)                                    # EUP
    o_ref[...] = (centered * inv * g_ref[...] + b_ref[...]).astype(o_ref.dtype)


def _pick_batch_block(B: int) -> int:
    """Whole batch if small; otherwise the largest multiple-of-8 divisor <= 64
    (keeps the sublane dim of partial batch blocks (8,128)-aligned)."""
    if B <= 64:
        return B
    for bb in range(64, 0, -8):
        if B % bb == 0:
            return bb
    return B


def routing_block_matrix(x, fpn_weights, gamma, beta, *, eps: float = 1e-5,
                         batch_block: int | None = None):
    """x: (B, N, H, W) float32; returns (B, N, H, W) float32."""
    B, N, H, W = x.shape
    D = H * W
    ND = N * D

    # ---- Host-side weight fusion (tiny; done once, outside the kernel) ----
    cum = None
    levels = []
    for w in fpn_weights:
        w = w.astype(jnp.float32)
        cum = w if cum is None else jnp.dot(w, cum, precision=jax.lax.Precision.HIGHEST)
        levels.append(cum)
    w_cat = jnp.concatenate(levels, axis=0)                            # (N, N)
    assert w_cat.shape == (N, N), "sum(rate_list) must equal num_capsule"
    # Expand over the flattened pose dims:  out_flat = x_flat @ kron(Wcat, I_D)^T
    w_big_t = jnp.kron(w_cat, jnp.eye(D, dtype=jnp.float32)).T         # (ND, ND)

    # ---- Lane-dense layouts (free reshapes, no transposes) ----
    x_flat = x.reshape(B, ND).astype(jnp.float32)
    g_flat = gamma.reshape(1, ND).astype(jnp.float32)
    b_flat = beta.reshape(1, ND).astype(jnp.float32)

    if batch_block is None:
        batch_block = _pick_batch_block(B)
    assert B % batch_block == 0
    grid = (B // batch_block,)

    kernel = functools.partial(_routing_kernel, eps=eps)

    out = pl.pallas_call(
        kernel,
        out_shape=jax.ShapeDtypeStruct((B, ND), jnp.float32),
        grid_spec=pltpu.PrefetchScalarGridSpec(
            num_scalar_prefetch=0,
            grid=grid,
            in_specs=[
                pl.BlockSpec((batch_block, ND), lambda i: (i, 0)),     # x tile
                pl.BlockSpec((ND, ND), lambda i: (0, 0)),              # fused weight
                pl.BlockSpec((1, ND), lambda i: (0, 0)),               # LayerNorm gamma
                pl.BlockSpec((1, ND), lambda i: (0, 0)),               # LayerNorm beta
            ],
            out_specs=pl.BlockSpec((batch_block, ND), lambda i: (i, 0)),
        ),
        compiler_params=pltpu.CompilerParams(
            dimension_semantics=("parallel",)),                        # shards TCs on v7x
    )(x_flat, w_big_t, g_flat, b_flat)
    return out.reshape(B, N, H, W)


def _reference(x, fpn_weights, gamma, beta, eps=1e-5):
    """Pure-JAX reference with the original sequential-cascade semantics."""
    B, N, H, W = x.shape
    y = x.reshape(B, N, H * W)
    levels = []
    cur = y
    for w in fpn_weights:
        cur = jnp.einsum("on,bnd->bod", w, cur,
                         precision=jax.lax.Precision.HIGHEST)
        levels.append(cur)
    fp = jnp.concatenate(levels, axis=1)                               # (B, N, D)
    mean = jnp.mean(fp, axis=(1, 2), keepdims=True)
    var = jnp.mean((fp - mean) ** 2, axis=(1, 2), keepdims=True)
    norm = (fp - mean) / jnp.sqrt(var + eps)
    out = norm * gamma.reshape(1, N, H * W) + beta.reshape(1, N, H * W)
    return out.reshape(B, N, H, W)


if __name__ == "__main__":
    # Small deterministic problem: num_capsule=16, pose matrix 4x4, batch=2.
    B, N, H, W = 2, 16, 4, 4
    rate_list = [N // 2, N // 4, N // 8, N // 8]   # [8, 4, 2, 2] -> sums to N

    key = jax.random.PRNGKey(0)
    kx, k1, k2, k3, k4 = jax.random.split(key, 5)
    x = jax.random.normal(kx, (B, N, H, W), dtype=jnp.float32)

    # FPN level weights (capsule-axis linear maps), deterministic init.
    in_caps = [N] + rate_list[:-1]
    fpn_weights = [
        jax.random.normal(k, (out_c, in_c), dtype=jnp.float32) * (1.0 / np.sqrt(in_c))
        for k, out_c, in_c in zip((k1, k2, k3, k4), rate_list, in_caps)
    ]

    # nn.LayerNorm([N, H, W]) default affine init: weight=1, bias=0.
    gamma = jnp.ones((N, H, W), dtype=jnp.float32)
    beta = jnp.zeros((N, H, W), dtype=jnp.float32)

    out = routing_block_matrix(x, fpn_weights, gamma, beta)
    out = jax.block_until_ready(out)

    ref = _reference(x, fpn_weights, gamma, beta)
    # Fused Wcat changes fp32 summation order vs. the sequential cascade
    # (~1e-6-level differences), so compare at a slightly relaxed tolerance.
    np.testing.assert_allclose(np.asarray(out), np.asarray(ref), rtol=2e-4, atol=2e-4)

    print("KERNEL_OK")
</pallas_src>

<mosaic_0001>
module attributes {stable_mosaic.version = 11 : i64} {
  func.func @_routing_kernel(%arg0: i32, %arg1: memref<2x256xf32, #tpu.memory_space<vmem>>, %arg2: memref<256x256xf32, #tpu.memory_space<vmem>>, %arg3: memref<1x256xf32, #tpu.memory_space<vmem>>, %arg4: memref<1x256xf32, #tpu.memory_space<vmem>>, %arg5: memref<2x256xf32, #tpu.memory_space<vmem>>) attributes {dimension_semantics = [#tpu.dimension_semantics<parallel>], iteration_bounds = array<i64: 1>, scalar_prefetch = 0 : i64, scratch_operands = 0 : i64, tpu.core_type = #tpu.core_type<tc>, window_params = [{transform_indices = @transform_0, window_bounds = array<i64: 2, 256>}, {pipeline_mode = #tpu.pipeline_mode<synchronous>, transform_indices = @transform_1, window_bounds = array<i64: 256, 256>}, {pipeline_mode = #tpu.pipeline_mode<synchronous>, transform_indices = @transform_2, window_bounds = array<i64: 1, 256>}, {pipeline_mode = #tpu.pipeline_mode<synchronous>, transform_indices = @transform_3, window_bounds = array<i64: 1, 256>}, {transform_indices = @transform_4, window_bounds = array<i64: 2, 256>}]} {
    %c0 = arith.constant 0 : index
    %c0_0 = arith.constant 0 : index
    %0 = vector.load %arg1[%c0, %c0_0] : memref<2x256xf32, #tpu.memory_space<vmem>>, vector<2x256xf32>
    %c0_1 = arith.constant 0 : index
    %c0_2 = arith.constant 0 : index
    %1 = vector.load %arg2[%c0_1, %c0_2] : memref<256x256xf32, #tpu.memory_space<vmem>>, vector<256x256xf32>
    %cst = arith.constant dense<0.000000e+00> : vector<2x256xf32>
    %2 = tpu.matmul %0, %1, %cst {dimension_numbers = #tpu.dot_dimension_numbers<[1], [0], [0], [1], [0, 0, 1, 1], [], []>} : vector<2x256xf32>, vector<256x256xf32>, vector<2x256xf32> -> vector<2x256xf32>
    %cst_3 = arith.constant dense<0.000000e+00> : vector<2xf32>
    %3 = vector.multi_reduction <add>, %2, %cst_3 [1] : vector<2x256xf32> to vector<2xf32>
    %4 = vector.shape_cast %3 : vector<2xf32> to vector<2x1xf32>
    %cst_4 = arith.constant 2.560000e+02 : f32
    %5 = vector.broadcast %cst_4 : f32 to vector<2x1xf32>
    %6 = arith.divf %4, %5 : vector<2x1xf32>
    %7 = vector.broadcast %6 : vector<2x1xf32> to vector<2x256xf32>
    %8 = arith.subf %2, %7 : vector<2x256xf32>
    %9 = arith.mulf %8, %8 : vector<2x256xf32>
    %cst_5 = arith.constant dense<0.000000e+00> : vector<2xf32>
    %10 = vector.multi_reduction <add>, %9, %cst_5 [1] : vector<2x256xf32> to vector<2xf32>
    %11 = vector.shape_cast %10 : vector<2xf32> to vector<2x1xf32>
    %cst_6 = arith.constant 2.560000e+02 : f32
    %12 = vector.broadcast %cst_6 : f32 to vector<2x1xf32>
    %13 = arith.divf %11, %12 : vector<2x1xf32>
    %cst_7 = arith.constant 9.99999974E-6 : f32
    %14 = vector.broadcast %cst_7 : f32 to vector<2x1xf32>
    %15 = arith.addf %13, %14 : vector<2x1xf32>
    %16 = math.rsqrt %15 : vector<2x1xf32>
    %17 = vector.broadcast %16 : vector<2x1xf32> to vector<2x256xf32>
    %18 = arith.mulf %8, %17 : vector<2x256xf32>
    %c0_8 = arith.constant 0 : index
    %c0_9 = arith.constant 0 : index
    %19 = vector.load %arg3[%c0_8, %c0_9] : memref<1x256xf32, #tpu.memory_space<vmem>>, vector<1x256xf32>
    %20 = vector.broadcast %19 : vector<1x256xf32> to vector<2x256xf32>
    %21 = arith.mulf %18, %20 : vector<2x256xf32>
    %c0_10 = arith.constant 0 : index
    %c0_11 = arith.constant 0 : index
    %22 = vector.load %arg4[%c0_10, %c0_11] : memref<1x256xf32, #tpu.memory_space<vmem>>, vector<1x256xf32>
    %23 = vector.broadcast %22 : vector<1x256xf32> to vector<2x256xf32>
    %24 = arith.addf %21, %23 : vector<2x256xf32>
    %c0_12 = arith.constant 0 : index
    %c0_13 = arith.constant 0 : index
    %25 = vector.load %arg5[%c0_12, %c0_13] : memref<2x256xf32, #tpu.memory_space<vmem>>, vector<2x256xf32>
    tpu.vector_store %arg5[%c0_12, %c0_13], %24 {strides = array<i32>} : memref<2x256xf32, #tpu.memory_space<vmem>>, vector<2x256xf32>,
    return
  }
  func.func @transform_0(%arg0: i32) -> (i32, i32) {
    %c0_i32 = arith.constant 0 : i32
    %c0_i32_0 = arith.constant 0 : i32
    return %arg0, %c0_i32 : i32, i32
  }
  func.func @transform_1(%arg0: i32) -> (i32, i32) {
    %c0_i32 = arith.constant 0 : i32
    %c0_i32_0 = arith.constant 0 : i32
    %c0_i32_1 = arith.constant 0 : i32
    return %c0_i32, %c0_i32_0 : i32, i32
  }
  func.func @transform_2(%arg0: i32) -> (i32, i32) {
    %c0_i32 = arith.constant 0 : i32
    %c0_i32_0 = arith.constant 0 : i32
    %c0_i32_1 = arith.constant 0 : i32
    return %c0_i32, %c0_i32_0 : i32, i32
  }
  func.func @transform_3(%arg0: i32) -> (i32, i32) {
    %c0_i32 = arith.constant 0 : i32
    %c0_i32_0 = arith.constant 0 : i32
    %c0_i32_1 = arith.constant 0 : i32
    return %c0_i32, %c0_i32_0 : i32, i32
  }
  func.func @transform_4(%arg0: i32) -> (i32, i32) {
    %c0_i32 = arith.constant 0 : i32
    %c0_i32_0 = arith.constant 0 : i32
    return %arg0, %c0_i32 : i32, i32
  }
}

</mosaic_0001>

<bundles_post_ra>
// kernel: tpu_custom_call.1
= control target key start
LH: loop header
LB: loop body
LE: loop exit
PB: predicated region body
PF: predicated region fallthrough
CT: control target
= control target key end

     0   :  { %9 = vsyncpa [#allocation3], 0  ;;  %s454_s0 = inlined_call_operand.hbm [shape: f32[2,256], index: 0, kind: input, shape index: {}]   ;;  %s455_s1 = inlined_call_operand.hbm [shape: f32[256,256], index: 1, kind: input, shape index: {}]   ;;  %s456_s2 = inlined_call_operand.hbm [shape: f32[1,256], index: 2, kind: input, shape index: {}]   ;;  %s457_s3 = inlined_call_operand.vmem [shape: f32[1,256], index: 3, kind: input, shape index: {}]   ;;  %s458_s4 = inlined_call_operand.hbm [shape: f32[2,256], index: 4, kind: output, shape index: {}]  }
   0x1   :  { %10 = vsyncpa [#allocation6], 0  ;;  %s27_s17 = sshll.u32 %s455_s1, 4  ;;  %s28_s17 = int_to_ptr.hbm [resolvable:$true] %s27_s17 }
   0x2   :  { %11 = vsyncpa [#allocation4], 0  ;;  %s402_s18 = smov [#allocation5]   ;;  %s17_s22 = sshll.u32 %s454_s0, 4  ;;  %s18_s22 = int_to_ptr.hbm [resolvable:$true] %s17_s22 }
   0x3   :  { %s29_s19 = sshll.u32 %s402_s18, 4  ;;  %s403_s23 = smov 256   ;;  %s30_s19 = int_to_ptr.vmem [resolvable:$true] %s29_s19 }
   0x4   :  { %s404_s24 = smov 16   ;;  %s405_s25 = smov [#allocation2]  }
   0x5   :  { %35 = dma.hbm_to_vmem [thread:$0]  %s28_s17, 8192, %s30_s19, [#allocation6], %s403_s23, %s403_s23, %s404_s24  }
   0x6   :  { %s19_s26 = sshll.u32 %s405_s25, 4  ;;  %s41_s29 = sshll.u32 %s456_s2, 4  ;;  %s20_s26 = int_to_ptr.vmem [resolvable:$true] %s19_s26  ;;  %s42_s29 = int_to_ptr.hbm [resolvable:$true] %s41_s29 }
   0x7   :  { %22 = dma.hbm_to_vmem [thread:$0]  %s18_s22, 64, %s20_s26, [#allocation3]  }
   0x8   :  { %s406_s1 = smov [#allocation7]  }
   0x9   :  { %s43_s30 = sshll.u32 %s406_s1, 4  ;;  %s44_s30 = int_to_ptr.vmem [resolvable:$true] %s43_s30 }
   0xa   :  { %46 = dma.hbm_to_vmem [thread:$0]  %s42_s29, 32, %s44_s30, [#allocation6]  }
   0xb   :  { %396 = dma.done.wait [#allocation3], 64  }
   0xc   :  { %397 = vsyncadd [#allocation3], 4294967232 }
   0xd   :  { %398 = dma.done.wait [#allocation6], 8224  }
   0xe   :  { %399 = vsyncadd [#allocation6], 4294959072  ;;  %v93_v0 = vld [vmem:[#allocation5 + $0xf8] sm:$0xff]  ;;  %v91_v2 = vld [vmem:[#allocation5 + $0xe8] sm:$0xff]  ;;  %vm212_vm0 = vcmask 1041408   ;;  %s408_s5 = smov [#allocation8]  }
   0xf   :  { %v125_v1 = vld [vmem:[#allocation5 + $0x1f8] sm:$0xff]  ;;  %172 = vmatpush.msra.mxu2 %v93_v0  ;;  %v123_v3 = vld [vmem:[#allocation5 + $0x1e8] sm:$0xff]  ;;  %v92_v6 = vld [vmem:[#allocation5 + $0xf0] sm:$0xff]  ;;  %s276_s6 = sshll.u32 %s408_s5, 4  ;;  %s278_s9 = sshll.u32 %s458_s4, 4  ;;  %s277_s6 = int_to_ptr.vmem [resolvable:$true] %s276_s6  ;;  %s279_s9 = int_to_ptr.hbm [resolvable:$true] %s278_s9 }
  0x10   :  { %192 = vmatpush.msra.mxu3 %v125_v1  ;;  %v89_v4 = vld [vmem:[#allocation5 + $0xd8] sm:$0xff]  ;;  %v124_v7 = vld [vmem:[#allocation5 + $0x1f0] sm:$0xff]  ;;  %v90_v8 = vld [vmem:[#allocation5 + $0xe0] sm:$0xff]  ;;  %132 = vmatpush.msra.mxu0 %v92_v6 }
  0x11   :  { %v121_v5 = vld [vmem:[#allocation5 + $0x1d8] sm:$0xff]  ;;  %173 = vmatpush.msra.mxu2 %v91_v2  ;;  %v122_v9 = vld [vmem:[#allocation5 + $0x1e0] sm:$0xff]  ;;  %152 = vmatpush.msra.mxu1 %v124_v7  ;;  %v87_v10 = vld [vmem:[#allocation5 + $0xc8] sm:$0xff] }
  0x12   :  { %193 = vmatpush.msra.mxu3 %v123_v3  ;;  %v119_v11 = vld [vmem:[#allocation5 + $0x1c8] sm:$0xff]  ;;  %v88_v12 = vld [vmem:[#allocation5 + $0xd0] sm:$0xff]  ;;  %133 = vmatpush.msra.mxu0 %v90_v8  ;;  %v85_v14 = vld [vmem:[#allocation5 + $0xb8] sm:$0xff] }
  0x13   :  { %174 = vmatpush.msra.mxu2 %v89_v4  ;;  %v120_v13 = vld [vmem:[#allocation5 + $0x1d0] sm:$0xff]  ;;  %153 = vmatpush.msra.mxu1 %v122_v9  ;;  %v117_v15 = vld [vmem:[#allocation5 + $0x1b8] sm:$0xff]  ;;  %v86_v16 = vld [vmem:[#allocation5 + $0xc0] sm:$0xff] }
  0x14   :  { %194 = vmatpush.msra.mxu3 %v121_v5  ;;  %v118_v17 = vld [vmem:[#allocation5 + $0x1c0] sm:$0xff]  ;;  %134 = vmatpush.msra.mxu0 %v88_v12  ;;  %v83_v18 = vld [vmem:[#allocation5 + $0xa8] sm:$0xff]  ;;  %v84_v20 = vld [vmem:[#allocation5 + $0xb0] sm:$0xff]  ;;  %v407_v12 = vmov 256.0  }
  0x15   :  { %175 = vmatpush.msra.mxu2 %v87_v10  ;;  %154 = vmatpush.msra.mxu1 %v120_v13  ;;  %v115_v19 = vld [vmem:[#allocation5 + $0x1a8] sm:$0xff]  ;;  %v116_v21 = vld [vmem:[#allocation5 + $0x1b0] sm:$0xff]  ;;  %v81_v22 = vld [vmem:[#allocation5 + $0x98] sm:$0xff]  ;;  %296 = vrcp.f32 %v407_v12 }
  0x16   :  { %195 = vmatpush.msra.mxu3 %v119_v11  ;;  %135 = vmatpush.msra.mxu0 %v86_v16  ;;  %v113_v23 = vld [vmem:[#allocation5 + $0x198] sm:$0xff]  ;;  %v82_v24 = vld [vmem:[#allocation5 + $0xa0] sm:$0xff]  ;;  %v79_v26 = vld [vmem:[#allocation5 + $0x88] sm:$0xff] }
  0x17   :  { %176 = vmatpush.msra.mxu2 %v85_v14  ;;  %155 = vmatpush.msra.mxu1 %v118_v17  ;;  %v114_v25 = vld [vmem:[#allocation5 + $0x1a0] sm:$0xff]  ;;  %v111_v27 = vld [vmem:[#allocation5 + $0x188] sm:$0xff]  ;;  %v80_v28 = vld [vmem:[#allocation5 + $0x90] sm:$0xff] }
  0x18   :  { %196 = vmatpush.msra.mxu3 %v117_v15  ;;  %136 = vmatpush.msra.mxu0 %v84_v20  ;;  %v112_v29 = vld [vmem:[#allocation5 + $0x190] sm:$0xff]  ;;  %v77_v30 = vld [vmem:[#allocation5 + $0x78] sm:$0xff]  ;;  %v78_v32 = vld [vmem:[#allocation5 + $0x80] sm:$0xff] }
  0x19   :  { %177 = vmatpush.msra.mxu2 %v83_v18  ;;  %156 = vmatpush.msra.mxu1 %v116_v21  ;;  %v109_v31 = vld [vmem:[#allocation5 + $0x178] sm:$0xff]  ;;  %v110_v33 = vld [vmem:[#allocation5 + $0x180] sm:$0xff]  ;;  %v75_v34 = vld [vmem:[#allocation5 + $0x68] sm:$0xff] }
  0x1a   :  { %197 = vmatpush.msra.mxu3 %v115_v19  ;;  %137 = vmatpush.msra.mxu0 %v82_v24  ;;  %v107_v35 = vld [vmem:[#allocation5 + $0x168] sm:$0xff]  ;;  %v76_v36 = vld [vmem:[#allocation5 + $0x70] sm:$0xff]  ;;  %v73_v38 = vld [vmem:[#allocation5 + $0x58] sm:$0xff] }
  0x1b   :  { %178 = vmatpush.msra.mxu2 %v81_v22  ;;  %157 = vmatpush.msra.mxu1 %v114_v25  ;;  %v108_v37 = vld [vmem:[#allocation5 + $0x170] sm:$0xff]  ;;  %v105_v39 = vld [vmem:[#allocation5 + $0x158] sm:$0xff]  ;;  %v74_v40 = vld [vmem:[#allocation5 + $0x60] sm:$0xff]  ;;  %v297_v13 = vpop.eup %296 }
  0x1c   :  { %198 = vmatpush.msra.mxu3 %v113_v23  ;;  %138 = vmatpush.msra.mxu0 %v80_v28  ;;  %v106_v41 = vld [vmem:[#allocation5 + $0x160] sm:$0xff]  ;;  %v61_v42 = vld [vmem:[#allocation2] sm:$0xf]  ;;  %v71_v43 = vld [vmem:[#allocation5 + $0x48] sm:$0xff]  ;;  %v219_v14 = vmul.f32 256.0, %v297_v13  ;;  %vm223_vm1 = vweird.f32 %v297_v13 }
  0x1d   :  { %179 = vmatpush.msra.mxu2 %v79_v26  ;;  %158 = vmatpush.msra.mxu1 %v112_v29  ;;  %v103_v44 = vld [vmem:[#allocation5 + $0x148] sm:$0xff]  ;;  %127 = vst [vmem:[#allocation1] ss:$4 sm:$0xff] %v61_v42  ;;  %v72_v45 = vld [vmem:[#allocation5 + $0x50] sm:$0xff]  ;;  %v69_v47 = vld [vmem:[#allocation5 + $0x38] sm:$0xff] }
  0x1e   :  { %199 = vmatpush.msra.mxu3 %v111_v27  ;;  %139 = vmatpush.msra.mxu0 %v78_v32  ;;  %v104_v46 = vld [vmem:[#allocation5 + $0x150] sm:$0xff]  ;;  %v101_v48 = vld [vmem:[#allocation5 + $0x138] sm:$0xff]  ;;  %v70_v49 = vld [vmem:[#allocation5 + $0x40] sm:$0xff]  ;;  %v220_v15 = vsub.f32 1.0, %v219_v14 }
  0x1f   :  { %180 = vmatpush.msra.mxu2 %v77_v30  ;;  %159 = vmatpush.msra.mxu1 %v110_v33  ;;  %v102_v50 = vld [vmem:[#allocation5 + $0x140] sm:$0xff]  ;;  %v67_v51 = vld [vmem:[#allocation5 + $0x28] sm:$0xff]  ;;  %v68_v53 = vld [vmem:[#allocation5 + $0x30] sm:$0xff] }
  0x20   :  { %200 = vmatpush.msra.mxu3 %v109_v31  ;;  %140 = vmatpush.msra.mxu0 %v76_v36  ;;  %v99_v52 = vld [vmem:[#allocation5 + $0x128] sm:$0xff]  ;;  %v100_v54 = vld [vmem:[#allocation5 + $0x130] sm:$0xff]  ;;  %v65_v55 = vld [vmem:[#allocation5 + $0x18] sm:$0xff]  ;;  %v221_v16 = vmul.f32 %v297_v13, %v220_v15 }
  0x21   :  { %181 = vmatpush.msra.mxu2 %v75_v34  ;;  %160 = vmatpush.msra.mxu1 %v108_v37  ;;  %v97_v56 = vld [vmem:[#allocation5 + $0x118] sm:$0xff]  ;;  %v66_v57 = vld [vmem:[#allocation5 + $0x20] sm:$0xff]  ;;  %v63_v59 = vld [vmem:[#allocation5 + $0x8] sm:$0xff] }
  0x22   :  { %201 = vmatpush.msra.mxu3 %v107_v35  ;;  %141 = vmatpush.msra.mxu0 %v74_v40  ;;  %v98_v58 = vld [vmem:[#allocation5 + $0x120] sm:$0xff]  ;;  %v95_v60 = vld [vmem:[#allocation5 + $0x108] sm:$0xff]  ;;  %v64_v63 = vld [vmem:[#allocation5 + $0x10] sm:$0xff]  ;;  %v222_v17 = vadd.f32 %v297_v13, %v221_v16 }
  0x23   :  { %182 = vmatpush.msra.mxu2 %v73_v38  ;;  %161 = vmatpush.msra.mxu1 %v106_v41  ;;  %v96_v0 = vld [vmem:[#allocation5 + $0x110] sm:$0xff]  ;;  %v62_v1 = vld [vmem:[#allocation5] sm:$0xff] }
  0x24   :  { %202 = vmatpush.msra.mxu3 %v105_v39  ;;  %142 = vmatpush.msra.mxu0 %v72_v45  ;;  %v128_v61 = vld.sshfl [vmem:[#allocation1] sm:$0xff pattern:$0x73625140]  ;;  %v129_v62 = vld.sshfl [vmem:[#allocation1 + $0x8] sm:$0xff pattern:$0x73625140]  ;;  %v224_v18 = vsel %vm223_vm1, %v297_v13, %v222_v17 }
  0x25   :  { %183 = vmatpush.msra.mxu2 %v71_v43  ;;  %162 = vmatpush.msra.mxu1 %v104_v46  ;;  %v94_v2 = vld [vmem:[#allocation5 + $0x100] sm:$0xff]  ;;  %v257_v38 = vld [vmem:[%s457_s3] sm:$0x3] }
  0x26   :  { %203 = vmatpush.msra.mxu3 %v103_v44  ;;  %143 = vmatpush.msra.mxu0 %v70_v49  ;;  %v249_v36 = vld [vmem:[#allocation7] sm:$0x3]  ;;  %v260_v44 = vperm.slane %v257_v38, 1 }
  0x27   :  { %184 = vmatpush.msra.mxu2 %v69_v47  ;;  %163 = vmatpush.msra.mxu1 %v102_v50  ;;  %v251_v39 = vperm.slane %v249_v36, 0  ;;  %v252_v40 = vperm.slane %v249_v36, 1  ;;  %v259_v47 = vperm.slane %v257_v38, 0 }
  0x28   :  { %204 = vmatpush.msra.mxu3 %v101_v48  ;;  %144 = vmatpush.msra.mxu0 %v68_v53 }
  0x29   :  { %185 = vmatpush.msra.mxu2 %v67_v51  ;;  %164 = vmatpush.msra.mxu1 %v100_v54 }
  0x2a   :  { %205 = vmatpush.msra.mxu3 %v99_v52  ;;  %145 = vmatpush.msra.mxu0 %v66_v57 }
  0x2b   :  { %186 = vmatpush.msra.mxu2 %v65_v55  ;;  %165 = vmatpush.msra.mxu1 %v98_v58 }
  0x2c   :  { %206 = vmatpush.msra.mxu3 %v97_v56  ;;  %146 = vmatpush.msra.mxu0 %v64_v63 }
  0x2d   :  { %187 = vmatpush.msra.mxu2 %v63_v59  ;;  %166 = vmatpush.msra.mxu1 %v96_v0 }
  0x2e   :  { %207 = vmatpush.msra.mxu3 %v95_v60  ;;  %188 = vmatmul.f32.vlgmr.msra.gmra.mxu2 %v128_v61 }
  0x2f   :  { %208 = vmatmul.f32.vlgmr.msra.gmra.mxu3 %v129_v62  ;;  %147 = vmatpush.msra.mxu0 %v62_v1 }
  0x30   :  { %167 = vmatpush.msra.mxu1 %v94_v2  ;;  %148 = vmatmul.f32.vlgmr.msra.gmra.mxu0 %v128_v61 }
  0x31   :  { %168 = vmatmul.f32.vlgmr.msra.gmra.mxu1 %v129_v62 }
  0xad   :  { %v149_v3 = vpop.f32.mrf.mxu0 }
  0xae   :  { %v169_v4 = vpop.f32.mrf.mxu1 }
  0xaf   :  { %v170_v5 = vadd.f32 %v169_v4, %v149_v3 }
  0xb1   :  { %v189_v6 = vpop.f32.mrf.mxu2  ;;  %v213_v9 = vsel %vm212_vm0, %v170_v5, 0.0 }
  0xb2   :  { %v209_v7 = vpop.f32.mrf.mxu3 }
  0xb3   :  { %v210_v8 = vadd.f32 %v209_v7, %v189_v6 }
  0xb5   :  { %v214_v10 = vsel %vm212_vm0, %v210_v8, 0.0 }
  0xb6   :  { %v215_v11 = vadd.f32 %v214_v10, %v213_v9 }
  0xb8   :  { %216 = vadd.xlane.f32.xlu0 %v215_v11 }
 0x12b   :  { %v217_v19 = vpop.xlane.xlu0 %216 }
 0x12c   :  { %v225_v20 = vmul.f32 %v224_v18, %v217_v19 }
 0x12e   :  { %v226_v21 = vsub.f32 %v170_v5, %v225_v20  ;;  %v227_v22 = vsub.f32 %v210_v8, %v225_v20 }
 0x130   :  { %v228_v23 = vmul.f32 %v226_v21, %v226_v21  ;;  %v229_v24 = vmul.f32 %v227_v22, %v227_v22 }
 0x132   :  { %v230_v25 = vsel %vm212_vm0, %v228_v23, 0.0  ;;  %v231_v26 = vsel %vm212_vm0, %v229_v24, 0.0 }
 0x133   :  { %v232_v27 = vadd.f32 %v231_v26, %v230_v25 }
 0x135   :  { %233 = vadd.xlane.f32.xlu0 %v232_v27 }
 0x1a8   :  { %v234_v28 = vpop.xlane.xlu0 %233 }
 0x1a9   :  { %v235_v29 = vmul.f32 %v234_v28, %v224_v18 }
 0x1ab   :  { %v236_v30 = vadd.f32 1e-05, %v235_v29 }
 0x1ad   :  { %298 = vrsqrt.f32 %v236_v30  ;;  %vm243_vm3 = vweird.f32 %v236_v30 }
 0x1b3   :  { %v299_v31 = vpop.eup %298 }
 0x1b4   :  { %v238_v32 = vmul.f32 %v299_v31, %v236_v30  ;;  %vm244_vm2 = vweird.f32 %v299_v31 }
 0x1b5   :  { %vm245_vm4 = vmor %vm243_vm3, %vm244_vm2 }
 0x1b6   :  { %v239_v33 = vmul.f32 %v299_v31, %v238_v32 }
 0x1b8   :  { %v240_v34 = vmul.f32 0.5, %v239_v33 }
 0x1ba   :  { %v241_v35 = vsub.f32 1.5, %v240_v34 }
 0x1bc   :  { %v242_v37 = vmul.f32 %v299_v31, %v241_v35 }
 0x1be   :  { %v246_v41 = vsel %vm245_vm4, %v299_v31, %v242_v37 }
 0x1bf   :  { %v247_v42 = vmul.f32 %v246_v41, %v226_v21  ;;  %v248_v43 = vmul.f32 %v246_v41, %v227_v22 }
 0x1c1   :  { %v255_v45 = vmul.f32 %v251_v39, %v247_v42  ;;  %v256_v46 = vmul.f32 %v252_v40, %v248_v43 }
 0x1c3   :  { %v264_v48 = vadd.f32 %v260_v44, %v256_v46  ;;  %v263_v49 = vadd.f32 %v259_v47, %v255_v45 }
 0x1c5   :  { %v267_v50 = vrot.slane %v264_v48, 6 }
 0x1c7   :  { %v268_v51 = vsel %vm212_vm0, %v263_v49, %v267_v50 }
 0x1c8   :  { %270 = vst [vmem:[#allocation8] sm:$0xf] %v268_v51 }
 0x1c9   :  { %281 = dma.vmem_to_hbm [thread:$0]  %s277_s6, 64, %s279_s9, [#allocation4]  }
 0x1ca   :  { %400 = dma.done.wait [#allocation4], 64  }
 0x1cb   :  { %401 = vsyncadd [#allocation4], 4294967232 }
 0x1cc   :  { %286 = vsyncpa [#allocation3], 1 }
 0x1cd   :  { %287 = vsyncpa [#allocation6], 1 }
 0x1ce   :  { %288 = vsyncpa [#allocation4], 1 }

</bundles_post_ra>
